<compile_context>
chip_gen: v5e
topology: v5e:2x2
jax: 0.10.0
libtpu: 0.0.40
codegen_flags: <defaults>
</compile_context>

<pallas_src>
import functools

import jax
import jax.numpy as jnp
from jax import lax
from jax.experimental import pallas as pl
from jax.experimental.pallas import tpu as pltpu


_LANE = 128            # lane width: pad fc3 output to a lane-dense multiple
_BATCH_TILE = 128      # batch tile for the gridded (large-batch) path
_GRID_THRESHOLD = 256  # B <= threshold -> single fused block (whole batch in VMEM)


def _dot_bf16(a, b):
    """MXU matmul: bf16 operands, f32 accumulation."""
    return jnp.dot(a.astype(jnp.bfloat16), b.astype(jnp.bfloat16),
                   preferred_element_type=jnp.float32)


# --------------------------------------------------------------------------
# Small-batch path: whole batch + all weights resident in VMEM, one kernel.
# --------------------------------------------------------------------------
def _qnet_fused_kernel(x_ref, w1_ref, b1_ref, gamma_ref, beta_ref,
                       w2_ref, b2_ref, w3_ref, b3_ref, out_ref,
                       *, apply_bn: bool, eps: float):
    x = x_ref[...].astype(jnp.float32)

    # fc1 + ReLU
    h1 = jnp.maximum(_dot_bf16(x, w1_ref[...]) + b1_ref[...], 0.0)

    # BatchNorm1d (training-mode batch stats) only when batch > 1, like torch.
    if apply_bn:
        mean = jnp.mean(h1, axis=0, keepdims=True)
        var = jnp.mean((h1 - mean) * (h1 - mean), axis=0, keepdims=True)
        scale = gamma_ref[...] * lax.rsqrt(var + eps)   # rsqrt -> EUP (free slot)
        shift = beta_ref[...] - mean * scale
        h1 = h1 * scale + shift                         # 2 VPU ops per element

    # fc2 + ReLU
    h2 = jnp.maximum(_dot_bf16(h1, w2_ref[...]) + b2_ref[...], 0.0)

    # fc3 (lane-padded output, sliced outside the kernel)
    out_ref[...] = (_dot_bf16(h2, w3_ref[...]) + b3_ref[...]).astype(out_ref.dtype)


# --------------------------------------------------------------------------
# Large-batch path, pass 1: global BN statistics over a batch grid.
# Grid axis is "arbitrary" (accumulator outputs resident across it).
# --------------------------------------------------------------------------
def _qnet_stats_kernel(x_ref, w1_ref, b1_ref, sum_ref, sumsq_ref,
                       *, batch: int, tile: int):
    i = pl.program_id(0)

    @pl.when(i == 0)
    def _():
        sum_ref[...] = jnp.zeros_like(sum_ref)
        sumsq_ref[...] = jnp.zeros_like(sumsq_ref)

    x = x_ref[...].astype(jnp.float32)
    h1 = jnp.maximum(_dot_bf16(x, w1_ref[...]) + b1_ref[...], 0.0)

    # Mask batch-padding rows so they don't contaminate the global statistics.
    row = i * tile + lax.broadcasted_iota(jnp.int32, h1.shape, 0)
    h1 = jnp.where(row < batch, h1, 0.0)

    sum_ref[...] += jnp.sum(h1, axis=0, keepdims=True)
    sumsq_ref[...] += jnp.sum(h1 * h1, axis=0, keepdims=True)


# --------------------------------------------------------------------------
# Large-batch path, pass 2: per-tile forward with precomputed global BN
# scale/shift. Weights VMEM-resident (index_map -> (0, 0)); batch grid is
# "parallel" so v7x's two TensorCores split the tiles.
# --------------------------------------------------------------------------
def _qnet_tile_kernel(x_ref, w1_ref, b1_ref, scale_ref, shift_ref,
                      w2_ref, b2_ref, w3_ref, b3_ref, out_ref):
    x = x_ref[...].astype(jnp.float32)
    h1 = jnp.maximum(_dot_bf16(x, w1_ref[...]) + b1_ref[...], 0.0)
    h1 = h1 * scale_ref[...] + shift_ref[...]            # BN with global stats
    h2 = jnp.maximum(_dot_bf16(h1, w2_ref[...]) + b2_ref[...], 0.0)
    out_ref[...] = (_dot_bf16(h2, w3_ref[...]) + b3_ref[...]).astype(out_ref.dtype)


def qnetwork_forward(state, params, eps=1e-5):
    """state: [B, state_size] or [state_size]."""
    if state.ndim == 1:
        state = state[None, :]
    batch, state_size = state.shape
    apply_bn = batch > 1  # static (trace-time) decision, same as the torch code

    w1, b1, gamma, beta, w2, b2, w3, b3 = params
    fc1 = w1.shape[1]
    fc2 = w2.shape[1]
    action_size = w3.shape[1]

    # Lane-pad the fc3 output so the final store is lane-dense.
    n_pad = _LANE * pl.cdiv(action_size, _LANE)
    w3p = jnp.zeros((fc2, n_pad), w3.dtype).at[:, :action_size].set(w3)
    b3p = jnp.zeros((1, n_pad), b3.dtype).at[:, :action_size].set(b3)

    vmem = pl.BlockSpec(memory_space=pltpu.MemorySpace.VMEM)

    if batch <= _GRID_THRESHOLD:
        # Whole batch + all weights (~130 KiB) comfortably in VMEM: one kernel.
        kernel = functools.partial(_qnet_fused_kernel, apply_bn=apply_bn, eps=eps)
        out = pl.pallas_call(
            kernel,
            out_shape=jax.ShapeDtypeStruct((batch, n_pad), jnp.float32),
            in_specs=[vmem] * 9,
            out_specs=vmem,
        )(state, w1, b1, gamma, beta, w2, b2, w3p, b3p)
        return out[:, :action_size]

    # ---------------- batch-gridded path (batch > threshold) ----------------
    tile = _BATCH_TILE
    n_tiles = pl.cdiv(batch, tile)
    b_pad = n_tiles * tile
    x = jnp.pad(state, ((0, b_pad - batch), (0, 0)))

    def resident(shape):
        return pl.BlockSpec(shape, lambda i: (0, 0))

    # Pass 1: global sum / sum-of-squares of ReLU(fc1(x)) over the full batch.
    ssum, ssq = pl.pallas_call(
        functools.partial(_qnet_stats_kernel, batch=batch, tile=tile),
        out_shape=(jax.ShapeDtypeStruct((1, fc1), jnp.float32),
                   jax.ShapeDtypeStruct((1, fc1), jnp.float32)),
        grid=(n_tiles,),
        in_specs=[pl.BlockSpec((tile, state_size), lambda i: (i, 0)),
                  resident((state_size, fc1)),
                  resident((1, fc1))],
        out_specs=(resident((1, fc1)), resident((1, fc1))),
        compiler_params=pltpu.CompilerParams(
            dimension_semantics=("arbitrary",)),
    )(x, w1, b1)

    # Tiny [1, fc1] math in plain JAX: fold BN into a single scale/shift.
    # (batch > threshold > 1 here, so BN always applies on this path.)
    mean = ssum / batch
    var = ssq / batch - mean * mean
    scale = gamma * lax.rsqrt(var + eps)
    shift = beta - mean * scale

    # Pass 2: batch-tiled forward, weights VMEM-resident, tiles run "parallel".
    out = pl.pallas_call(
        _qnet_tile_kernel,
        out_shape=jax.ShapeDtypeStruct((b_pad, n_pad), jnp.float32),
        grid=(n_tiles,),
        in_specs=[pl.BlockSpec((tile, state_size), lambda i: (i, 0)),
                  resident((state_size, fc1)),
                  resident((1, fc1)),
                  resident((1, fc1)),
                  resident((1, fc1)),
                  resident((fc1, fc2)),
                  resident((1, fc2)),
                  resident((fc2, n_pad)),
                  resident((1, n_pad))],
        out_specs=pl.BlockSpec((tile, n_pad), lambda i: (i, 0)),
        compiler_params=pltpu.CompilerParams(
            dimension_semantics=("parallel",)),
    )(x, w1, b1, scale, shift, w2, b2, w3p, b3p)
    return out[:batch, :action_size]


def init_params(key, state_size, action_size, fc1_units=128, fc2_units=128):
    """nn.Linear-style U(-1/sqrt(fan_in), 1/sqrt(fan_in)); BN gamma=1, beta=0."""
    ks = jax.random.split(key, 6)

    def linear(kw, kb, fan_in, fan_out):
        bound = 1.0 / jnp.sqrt(jnp.float32(fan_in))
        w = jax.random.uniform(kw, (fan_in, fan_out), jnp.float32, -bound, bound)
        b = jax.random.uniform(kb, (1, fan_out), jnp.float32, -bound, bound)
        return w, b

    w1, b1 = linear(ks[0], ks[1], state_size, fc1_units)
    w2, b2 = linear(ks[2], ks[3], fc1_units, fc2_units)
    w3, b3 = linear(ks[4], ks[5], fc2_units, action_size)
    gamma = jnp.ones((1, fc1_units), jnp.float32)
    beta = jnp.zeros((1, fc1_units), jnp.float32)
    return (w1, b1, gamma, beta, w2, b2, w3, b3)


def reference_forward(state, params, eps=1e-5):
    """Pure-JAX reference (same bf16-at-dot / f32-elsewhere policy as the kernel)."""
    if state.ndim == 1:
        state = state[None, :]
    w1, b1, gamma, beta, w2, b2, w3, b3 = params

    def dot(a, b):
        return jnp.dot(a.astype(jnp.bfloat16), b.astype(jnp.bfloat16),
                       preferred_element_type=jnp.float32)

    h1 = jnp.maximum(dot(state, w1) + b1, 0.0)
    if state.shape[0] > 1:
        mean = jnp.mean(h1, axis=0, keepdims=True)
        var = jnp.mean((h1 - mean) ** 2, axis=0, keepdims=True)
        h1 = (h1 - mean) / jnp.sqrt(var + eps) * gamma + beta
    h2 = jnp.maximum(dot(h1, w2) + b2, 0.0)
    return dot(h2, w3) + b3


if __name__ == "__main__":
    key = jax.random.PRNGKey(0)
    k_param, k_small, k_one, k_large = jax.random.split(key, 4)

    state_size = 16
    action_size = 4
    params = init_params(k_param, state_size, action_size)

    # Small batch -> single fused whole-batch-in-VMEM kernel (BN applied).
    x_small = jax.random.normal(k_small, (8, state_size), jnp.float32)
    out_small = jax.block_until_ready(qnetwork_forward(x_small, params))
    ref_small = reference_forward(x_small, params)
    assert out_small.shape == (8, action_size)
    assert jnp.allclose(out_small, ref_small, atol=2e-2, rtol=2e-2), "small-batch mismatch"

    # Single sample (1-D input) -> BN skipped, like the torch forward.
    x_one = jax.random.normal(k_one, (state_size,), jnp.float32)
    out_one = jax.block_until_ready(qnetwork_forward(x_one, params))
    ref_one = reference_forward(x_one, params)
    assert out_one.shape == (1, action_size)
    assert jnp.allclose(out_one, ref_one, atol=2e-2, rtol=2e-2), "batch-1 mismatch"

    # Large batch -> batch-gridded path (global-stats pass + parallel tile pass),
    # including a ragged last tile (300 = 2*128 + 44) to exercise the masking.
    x_large = jax.random.normal(k_large, (300, state_size), jnp.float32)
    out_large = jax.block_until_ready(qnetwork_forward(x_large, params))
    ref_large = reference_forward(x_large, params)
    assert out_large.shape == (300, action_size)
    assert jnp.allclose(out_large, ref_large, atol=2e-2, rtol=2e-2), "large-batch mismatch"

    print("KERNEL_OK")
</pallas_src>

<mosaic_0001>
module attributes {stable_mosaic.version = 11 : i64} {
  func.func @_qnet_fused_kernel(%arg0: memref<8x16xf32, #tpu.memory_space<vmem>>, %arg1: memref<16x128xf32, #tpu.memory_space<vmem>>, %arg2: memref<1x128xf32, #tpu.memory_space<vmem>>, %arg3: memref<1x128xf32, #tpu.memory_space<vmem>>, %arg4: memref<1x128xf32, #tpu.memory_space<vmem>>, %arg5: memref<128x128xf32, #tpu.memory_space<vmem>>, %arg6: memref<1x128xf32, #tpu.memory_space<vmem>>, %arg7: memref<128x128xf32, #tpu.memory_space<vmem>>, %arg8: memref<1x128xf32, #tpu.memory_space<vmem>>, %arg9: memref<8x128xf32, #tpu.memory_space<vmem>>) attributes {dimension_semantics = [], scalar_prefetch = 0 : i64, scratch_operands = 0 : i64, tpu.core_type = #tpu.core_type<tc>} {
    %c0 = arith.constant 0 : index
    %c0_0 = arith.constant 0 : index
    %0 = vector.load %arg0[%c0, %c0_0] : memref<8x16xf32, #tpu.memory_space<vmem>>, vector<8x16xf32>
    %c0_1 = arith.constant 0 : index
    %c0_2 = arith.constant 0 : index
    %1 = vector.load %arg1[%c0_1, %c0_2] : memref<16x128xf32, #tpu.memory_space<vmem>>, vector<16x128xf32>
    %2 = arith.truncf %0 : vector<8x16xf32> to vector<8x16xbf16>
    %3 = arith.truncf %1 : vector<16x128xf32> to vector<16x128xbf16>
    %cst = arith.constant dense<0.000000e+00> : vector<8x128xf32>
    %4 = tpu.matmul %2, %3, %cst {dimension_numbers = #tpu.dot_dimension_numbers<[1], [0], [0], [1], [0, 0, 1, 1], [], []>} : vector<8x16xbf16>, vector<16x128xbf16>, vector<8x128xf32> -> vector<8x128xf32>
    %c0_3 = arith.constant 0 : index
    %c0_4 = arith.constant 0 : index
    %5 = vector.load %arg2[%c0_3, %c0_4] : memref<1x128xf32, #tpu.memory_space<vmem>>, vector<1x128xf32>
    %6 = vector.broadcast %5 : vector<1x128xf32> to vector<8x128xf32>
    %7 = arith.addf %4, %6 : vector<8x128xf32>
    %cst_5 = arith.constant 0.000000e+00 : f32
    %8 = vector.broadcast %cst_5 : f32 to vector<8x128xf32>
    %9 = arith.maximumf %7, %8 : vector<8x128xf32>
    %cst_6 = arith.constant dense<0.000000e+00> : vector<128xf32>
    %10 = vector.multi_reduction <add>, %9, %cst_6 [0] : vector<8x128xf32> to vector<128xf32>
    %11 = vector.shape_cast %10 : vector<128xf32> to vector<1x128xf32>
    %cst_7 = arith.constant 8.000000e+00 : f32
    %12 = vector.broadcast %cst_7 : f32 to vector<1x128xf32>
    %13 = arith.divf %11, %12 : vector<1x128xf32>
    %14 = vector.broadcast %13 : vector<1x128xf32> to vector<8x128xf32>
    %15 = arith.subf %9, %14 : vector<8x128xf32>
    %16 = vector.broadcast %13 : vector<1x128xf32> to vector<8x128xf32>
    %17 = arith.subf %9, %16 : vector<8x128xf32>
    %18 = arith.mulf %15, %17 : vector<8x128xf32>
    %cst_8 = arith.constant dense<0.000000e+00> : vector<128xf32>
    %19 = vector.multi_reduction <add>, %18, %cst_8 [0] : vector<8x128xf32> to vector<128xf32>
    %20 = vector.shape_cast %19 : vector<128xf32> to vector<1x128xf32>
    %cst_9 = arith.constant 8.000000e+00 : f32
    %21 = vector.broadcast %cst_9 : f32 to vector<1x128xf32>
    %22 = arith.divf %20, %21 : vector<1x128xf32>
    %c0_10 = arith.constant 0 : index
    %c0_11 = arith.constant 0 : index
    %23 = vector.load %arg3[%c0_10, %c0_11] : memref<1x128xf32, #tpu.memory_space<vmem>>, vector<1x128xf32>
    %cst_12 = arith.constant 9.99999974E-6 : f32
    %24 = vector.broadcast %cst_12 : f32 to vector<1x128xf32>
    %25 = arith.addf %22, %24 : vector<1x128xf32>
    %26 = math.rsqrt %25 : vector<1x128xf32>
    %27 = arith.mulf %23, %26 : vector<1x128xf32>
    %c0_13 = arith.constant 0 : index
    %c0_14 = arith.constant 0 : index
    %28 = vector.load %arg4[%c0_13, %c0_14] : memref<1x128xf32, #tpu.memory_space<vmem>>, vector<1x128xf32>
    %29 = arith.mulf %13, %27 : vector<1x128xf32>
    %30 = arith.subf %28, %29 : vector<1x128xf32>
    %31 = vector.broadcast %27 : vector<1x128xf32> to vector<8x128xf32>
    %32 = arith.mulf %9, %31 : vector<8x128xf32>
    %33 = vector.broadcast %30 : vector<1x128xf32> to vector<8x128xf32>
    %34 = arith.addf %32, %33 : vector<8x128xf32>
    %c0_15 = arith.constant 0 : index
    %c0_16 = arith.constant 0 : index
    %35 = vector.load %arg5[%c0_15, %c0_16] : memref<128x128xf32, #tpu.memory_space<vmem>>, vector<128x128xf32>
    %36 = arith.truncf %34 : vector<8x128xf32> to vector<8x128xbf16>
    %37 = arith.truncf %35 : vector<128x128xf32> to vector<128x128xbf16>
    %cst_17 = arith.constant dense<0.000000e+00> : vector<8x128xf32>
    %38 = tpu.matmul %36, %37, %cst_17 {dimension_numbers = #tpu.dot_dimension_numbers<[1], [0], [0], [1], [0, 0, 1, 1], [], []>} : vector<8x128xbf16>, vector<128x128xbf16>, vector<8x128xf32> -> vector<8x128xf32>
    %c0_18 = arith.constant 0 : index
    %c0_19 = arith.constant 0 : index
    %39 = vector.load %arg6[%c0_18, %c0_19] : memref<1x128xf32, #tpu.memory_space<vmem>>, vector<1x128xf32>
    %40 = vector.broadcast %39 : vector<1x128xf32> to vector<8x128xf32>
    %41 = arith.addf %38, %40 : vector<8x128xf32>
    %cst_20 = arith.constant 0.000000e+00 : f32
    %42 = vector.broadcast %cst_20 : f32 to vector<8x128xf32>
    %43 = arith.maximumf %41, %42 : vector<8x128xf32>
    %c0_21 = arith.constant 0 : index
    %c0_22 = arith.constant 0 : index
    %44 = vector.load %arg7[%c0_21, %c0_22] : memref<128x128xf32, #tpu.memory_space<vmem>>, vector<128x128xf32>
    %45 = arith.truncf %43 : vector<8x128xf32> to vector<8x128xbf16>
    %46 = arith.truncf %44 : vector<128x128xf32> to vector<128x128xbf16>
    %cst_23 = arith.constant dense<0.000000e+00> : vector<8x128xf32>
    %47 = tpu.matmul %45, %46, %cst_23 {dimension_numbers = #tpu.dot_dimension_numbers<[1], [0], [0], [1], [0, 0, 1, 1], [], []>} : vector<8x128xbf16>, vector<128x128xbf16>, vector<8x128xf32> -> vector<8x128xf32>
    %c0_24 = arith.constant 0 : index
    %c0_25 = arith.constant 0 : index
    %48 = vector.load %arg8[%c0_24, %c0_25] : memref<1x128xf32, #tpu.memory_space<vmem>>, vector<1x128xf32>
    %49 = vector.broadcast %48 : vector<1x128xf32> to vector<8x128xf32>
    %50 = arith.addf %47, %49 : vector<8x128xf32>
    %c0_26 = arith.constant 0 : index
    %c0_27 = arith.constant 0 : index
    %51 = vector.load %arg9[%c0_26, %c0_27] : memref<8x128xf32, #tpu.memory_space<vmem>>, vector<8x128xf32>
    tpu.vector_store %arg9[%c0_26, %c0_27], %50 {strides = array<i32>} : memref<8x128xf32, #tpu.memory_space<vmem>>, vector<8x128xf32>,
    return
  }
}

</mosaic_0001>

<bundles_post_ra>
// kernel: tpu_custom_call.1
= control target key start
LH: loop header
LB: loop body
LE: loop exit
PB: predicated region body
PF: predicated region fallthrough
CT: control target
= control target key end

     0   :  { %14 = vsyncpa [#allocation3], 0  ;;  %s512_s0 = inlined_call_operand.hbm [shape: f32[8,16], index: 0, kind: input, shape index: {}]   ;;  %s513_s1 = inlined_call_operand.hbm [shape: f32[16,128], index: 1, kind: input, shape index: {}]   ;;  %s514_s2 = inlined_call_operand.vmem [shape: f32[1,128], index: 2, kind: input, shape index: {}]   ;;  %s515_s3 = inlined_call_operand.vmem [shape: f32[1,128], index: 3, kind: input, shape index: {}]   ;;  %s516_s4 = inlined_call_operand.vmem [shape: f32[1,128], index: 4, kind: input, shape index: {}]   ;;  %s517_s5 = inlined_call_operand.hbm [shape: f32[128,128], index: 5, kind: input, shape index: {}]   ;;  %s518_s6 = inlined_call_operand.vmem [shape: f32[1,128], index: 6, kind: input, shape index: {}]   ;;  %s519_s7 = inlined_call_operand.hbm [shape: f32[128,128], index: 7, kind: input, shape index: {}]   ;;  %s520_s8 = inlined_call_operand.vmem [shape: f32[1,128], index: 8, kind: input, shape index: {}]   ;;  %s521_s9 = inlined_call_operand.hbm [shape: f32[8,128], index: 9, kind: output, shape index: {}]  }
   0x1   :  { %15 = vsyncpa [#allocation6], 0 }
   0x2   :  { %16 = vsyncpa [#allocation9], 0  ;;  %s33_s11 = sshll.u32 %s513_s1, 4  ;;  %s34_s11 = int_to_ptr.hbm [resolvable:$true] %s33_s11 }
   0x3   :  { %17 = vsyncpa [#allocation4], 0  ;;  %s418_s12 = smov [#allocation5]   ;;  %s23_s16 = sshll.u32 %s512_s0, 4  ;;  %s24_s16 = int_to_ptr.hbm [resolvable:$true] %s23_s16 }
   0x4   :  { %s35_s13 = sshll.u32 %s418_s12, 4  ;;  %s419_s17 = smov 128   ;;  %s36_s13 = int_to_ptr.vmem [resolvable:$true] %s35_s13 }
   0x5   :  { %s420_s18 = smov 8   ;;  %s421_s19 = smov [#allocation2]  }
   0x6   :  { %41 = dma.hbm_to_vmem [thread:$0]  %s34_s11, 256, %s36_s13, [#allocation6], %s419_s17, %s419_s17, %s420_s18  }
   0x7   :  { %s25_s20 = sshll.u32 %s421_s19, 4  ;;  %s52_s23 = sshll.u32 %s517_s5, 4  ;;  %s26_s20 = int_to_ptr.vmem [resolvable:$true] %s25_s20  ;;  %s53_s23 = int_to_ptr.hbm [resolvable:$true] %s52_s23 }
   0x8   :  { %28 = dma.hbm_to_vmem [thread:$0]  %s24_s16, 128, %s26_s20, [#allocation3]  }
   0x9   :  { %s67_s25 = sshll.u32 %s519_s7, 4  ;;  %s422_s26 = smov [#allocation7]   ;;  %s68_s25 = int_to_ptr.hbm [resolvable:$true] %s67_s25 }
   0xa   :  { %s54_s27 = sshll.u32 %s422_s26, 4  ;;  %s423_s0 = smov [#allocation8]   ;;  %s55_s27 = int_to_ptr.vmem [resolvable:$true] %s54_s27 }
   0xb   :  { %60 = dma.hbm_to_vmem [thread:$0]  %s53_s23, 2048, %s55_s27, [#allocation6], %s419_s17, %s419_s17, %s420_s18  }
   0xc   :  { %s69_s28 = sshll.u32 %s423_s0, 4  ;;  %s70_s28 = int_to_ptr.vmem [resolvable:$true] %s69_s28 }
   0xd   :  { %75 = dma.hbm_to_vmem [thread:$0]  %s68_s25, 2048, %s70_s28, [#allocation9], %s419_s17, %s419_s17, %s420_s18  }
   0xe   :  { %410 = dma.done.wait [#allocation3], 128  }
   0xf   :  { %411 = vsyncadd [#allocation3], 4294967168 }
  0x10   :  { %412 = dma.done.wait [#allocation6], 2304  }
  0x11   :  { %413 = vsyncadd [#allocation6], 4294964992 }
  0x12   :  { %414 = dma.done.wait [#allocation9], 2048  }
  0x13   :  { %415 = vsyncadd [#allocation9], 4294965248  ;;  %v96_v0 = vld [vmem:[#allocation5] sm:$0xff]  ;;  %v97_v1 = vld [vmem:[#allocation5 + $0x8] sm:$0xff]  ;;  %vm104_vm0 = vcmask 130048   ;;  %v424_v16 = vmov 8.0  }
  0x14   :  { %v95_v2 = vld [vmem:[#allocation2] sm:$0xff]  ;;  %v99_v3 = vpack.c.bf16 %v97_v1, %v96_v0  ;;  %v183_v5 = vld [vmem:[#allocation7 + $0x70] sm:$0xff]  ;;  %v184_v6 = vld [vmem:[#allocation7 + $0x78] sm:$0xff]  ;;  %286 = vrcp.f32 %v424_v16  ;;  %s425_s13 = smov [#allocation10]   ;;  %s262_s17 = sshll.u32 %s521_s9, 4  ;;  %s263_s17 = int_to_ptr.hbm [resolvable:$true] %s262_s17 }
  0x15   :  { %v98_v4 = vpack.c.bf16 %v95_v2, %v95_v2  ;;  %v181_v7 = vld [vmem:[#allocation7 + $0x60] sm:$0xff]  ;;  %v193_v8 = vpack.c.bf16 %v184_v6, %v183_v5  ;;  %v182_v9 = vld [vmem:[#allocation7 + $0x68] sm:$0xff]  ;;  %v179_v11 = vld [vmem:[#allocation7 + $0x50] sm:$0xff]  ;;  %s260_s14 = sshll.u32 %s425_s13, 4  ;;  %s261_s14 = int_to_ptr.vmem [resolvable:$true] %s260_s14 }
  0x16   :  { %115 = vmatpush.bf16.msra.mxu0 %v99_v3  ;;  %v192_v10 = vpack.c.bf16 %v182_v9, %v181_v7  ;;  %v180_v12 = vld [vmem:[#allocation7 + $0x58] sm:$0xff]  ;;  %v177_v14 = vld [vmem:[#allocation7 + $0x40] sm:$0xff]  ;;  %v178_v15 = vld [vmem:[#allocation7 + $0x48] sm:$0xff] }
  0x17   :  { %198 = vmatpush.bf16.msra.mxu1 %v193_v8  ;;  %v191_v13 = vpack.c.bf16 %v180_v12, %v179_v11  ;;  %v190_v17 = vpack.c.bf16 %v178_v15, %v177_v14  ;;  %v175_v18 = vld [vmem:[#allocation7 + $0x30] sm:$0xff]  ;;  %v176_v19 = vld [vmem:[#allocation7 + $0x38] sm:$0xff]  ;;  %v173_v22 = vld [vmem:[#allocation7 + $0x20] sm:$0xff] }
  0x18   :  { %v189_v20 = vpack.c.bf16 %v176_v19, %v175_v18  ;;  %v174_v23 = vld [vmem:[#allocation7 + $0x28] sm:$0xff]  ;;  %v171_v27 = vld [vmem:[#allocation7 + $0x10] sm:$0xff]  ;;  %v172_v28 = vld [vmem:[#allocation7 + $0x18] sm:$0xff] }
  0x19   :  { %274 = vmatmul.msk.bf16.vlgmr.msra.gmra.mxu0 %vm104_vm0, %v98_v4  ;;  %v283_v24 = vld [vmem:[%s514_s2] ss:$0 sm:$0xff]  ;;  %v188_v25 = vpack.c.bf16 %v174_v23, %v173_v22  ;;  %v187_v31 = vpack.c.bf16 %v172_v28, %v171_v27  ;;  %v169_v34 = vld [vmem:[#allocation7] sm:$0xff]  ;;  %v226_v58 = vld [vmem:[#allocation8 + $0x70] sm:$0xff] }
  0x1a   :  { %v287_v21 = vpop.eup %286  ;;  %v170_v35 = vld [vmem:[#allocation7 + $0x8] sm:$0xff]  ;;  %v227_v59 = vld [vmem:[#allocation8 + $0x78] sm:$0xff]  ;;  %v224_v60 = vld [vmem:[#allocation8 + $0x60] sm:$0xff] }
  0x1b   :  { %199 = vmatpush.bf16.msra.mxu1 %v192_v10  ;;  %v129_v26 = vmul.f32 8.0, %v287_v21  ;;  %v186_v37 = vpack.c.bf16 %v170_v35, %v169_v34  ;;  %vm133_vm1 = vweird.f32 %v287_v21  ;;  %v236_v61 = vpack.c.bf16 %v227_v59, %v226_v58  ;;  %v225_v62 = vld [vmem:[#allocation8 + $0x68] sm:$0xff]  ;;  %v222_v0 = vld [vmem:[#allocation8 + $0x50] sm:$0xff]  ;;  %v223_v1 = vld [vmem:[#allocation8 + $0x58] sm:$0xff] }
  0x1c   :  { %v235_v63 = vpack.c.bf16 %v225_v62, %v224_v60  ;;  %v234_v2 = vpack.c.bf16 %v223_v1, %v222_v0  ;;  %v220_v4 = vld [vmem:[#allocation8 + $0x40] sm:$0xff]  ;;  %v221_v5 = vld [vmem:[#allocation8 + $0x48] sm:$0xff]  ;;  %v218_v9 = vld [vmem:[#allocation8 + $0x30] sm:$0xff] }
  0x1d   :  { %v130_v32 = vsub.f32 1.0, %v129_v26  ;;  %241 = vmatpush.bf16.msra.mxu2 %v236_v61  ;;  %v233_v8 = vpack.c.bf16 %v221_v5, %v220_v4  ;;  %v219_v10 = vld [vmem:[#allocation8 + $0x38] sm:$0xff]  ;;  %v216_v14 = vld [vmem:[#allocation8 + $0x20] sm:$0xff]  ;;  %v217_v15 = vld [vmem:[#allocation8 + $0x28] sm:$0xff] }
  0x1e   :  { %v145_v16 = vld [vmem:[%s515_s3] sm:$0x1]  ;;  %v231_v19 = vpack.c.bf16 %v217_v15, %v216_v14 }
  0x1f   :  { %200 = vmatpush.bf16.msra.mxu1 %v191_v13  ;;  %v131_v38 = vmul.f32 %v287_v21, %v130_v32  ;;  %v232_v13 = vpack.c.bf16 %v219_v10, %v218_v9  ;;  %v212_v32 = vld [vmem:[#allocation8] sm:$0xff]  ;;  %v213_v34 = vld [vmem:[#allocation8 + $0x8] sm:$0xff] }
  0x20   :  { %v229_v35 = vpack.c.bf16 %v213_v34, %v212_v32 }
  0x21   :  { %v132_v42 = vadd.f32 %v287_v21, %v131_v38  ;;  %242 = vmatpush.bf16.msra.mxu2 %v235_v63 }
  0x23   :  { %201 = vmatpush.bf16.msra.mxu1 %v190_v17  ;;  %v134_v45 = vsel %vm133_vm1, %v287_v21, %v132_v42  ;;  %v158_v21 = vld [vmem:[%s516_s4] sm:$0x1] }
  0x25   :  { %243 = vmatpush.bf16.msra.mxu2 %v234_v2 }
  0x27   :  { %202 = vmatpush.bf16.msra.mxu1 %v189_v20 }
  0x29   :  { %244 = vmatpush.bf16.msra.mxu2 %v233_v8 }
  0x2b   :  { %203 = vmatpush.bf16.msra.mxu1 %v188_v25 }
  0x2d   :  { %245 = vmatpush.bf16.msra.mxu2 %v232_v13 }
  0x2f   :  { %204 = vmatpush.bf16.msra.mxu1 %v187_v31 }
  0x31   :  { %246 = vmatpush.bf16.msra.mxu2 %v231_v19 }
  0x33   :  { %205 = vmatpush.bf16.msra.mxu1 %v186_v37 }
  0x96   :  { %v117_v29 = vpop.f32.mrf.mxu0 }
  0x97   :  { %v118_v30 = vadd.f32 %v283_v24, %v117_v29  ;;  %v214_v29 = vld [vmem:[#allocation8 + $0x10] sm:$0xff] }
  0x99   :  { %v491_v33 = vmax.f32 %v118_v30, 0.0  ;;  %v215_v30 = vld [vmem:[#allocation8 + $0x18] sm:$0xff] }
  0x9a   :  { %v230_v31 = vpack.c.bf16 %v215_v30, %v214_v29 }
  0x9b   :  { %v122_v36 = vrot.slane %v491_v33, 4 }
  0x9c   :  { %247 = vmatpush.bf16.msra.mxu2 %v230_v31 }
  0x9d   :  { %v123_v39 = vadd.f32 %v122_v36, %v491_v33  ;;  %v284_v36 = vld [vmem:[%s518_s6] ss:$0 sm:$0xff] }
  0x9e   :  { %v119_v40 = vpop.f32.mrf.mxu0 }
  0x9f   :  { %v124_v41 = vrot.slane %v123_v39, 2 }
  0xa0   :  { %248 = vmatpush.bf16.msra.mxu2 %v229_v35 }
  0xa1   :  { %v125_v43 = vadd.f32 %v124_v41, %v123_v39  ;;  %v285_v41 = vld [vmem:[%s520_s8] ss:$0 sm:$0xff] }
  0xa3   :  { %v126_v44 = vrot.slane %v125_v43, 1 }
  0xa5   :  { %v127_v46 = vadd.f32 %v126_v44, %v125_v43 }
  0xa7   :  { %v135_v47 = vmul.f32 %v134_v45, %v127_v46 }
  0xa9   :  { %v136_v48 = vsub.f32 %v491_v33, %v135_v47 }
  0xab   :  { %v137_v49 = vmul.f32 %v136_v48, %v136_v48 }
  0xad   :  { %v138_v50 = vrot.slane %v137_v49, 4 }
  0xaf   :  { %v139_v51 = vadd.f32 %v138_v50, %v137_v49 }
  0xb1   :  { %v140_v52 = vrot.slane %v139_v51, 2 }
  0xb3   :  { %v141_v53 = vadd.f32 %v140_v52, %v139_v51 }
  0xb5   :  { %v142_v54 = vrot.slane %v141_v53, 1 }
  0xb7   :  { %v143_v55 = vadd.f32 %v142_v54, %v141_v53 }
  0xb9   :  { %v144_v56 = vmul.f32 %v143_v55, %v134_v45 }
  0xbb   :  { %v146_v57 = vadd.f32 1e-05, %v144_v56 }
  0xbd   :  { %288 = vrsqrt.f32 %v146_v57  ;;  %vm153_vm3 = vweird.f32 %v146_v57 }
  0xc3   :  { %v289_v3 = vpop.eup %288 }
  0xc4   :  { %v148_v6 = vmul.f32 %v289_v3, %v146_v57  ;;  %vm154_vm2 = vweird.f32 %v289_v3 }
  0xc5   :  { %vm155_vm4 = vmor %vm153_vm3, %vm154_vm2 }
  0xc6   :  { %v149_v7 = vmul.f32 %v289_v3, %v148_v6 }
  0xc8   :  { %v150_v11 = vmul.f32 0.5, %v149_v7 }
  0xca   :  { %v151_v12 = vsub.f32 1.5, %v150_v11 }
  0xcc   :  { %v152_v17 = vmul.f32 %v289_v3, %v151_v12 }
  0xce   :  { %v156_v18 = vsel %vm155_vm4, %v289_v3, %v152_v17 }
  0xcf   :  { %v157_v20 = vmul.f32 %v156_v18, %v145_v16 }
  0xd1   :  { %v159_v22 = vmul.f32 %v157_v20, %v135_v47  ;;  %v162_v23 = vperm.slane %v157_v20, 0 }
  0xd3   :  { %v160_v24 = vsub.f32 %v158_v21, %v159_v22  ;;  %v164_v25 = vmul.f32 %v162_v23, %v491_v33 }
  0xd5   :  { %v166_v26 = vperm.slane %v160_v24, 0 }
  0xd7   :  { %v168_v27 = vadd.f32 %v166_v26, %v164_v25 }
  0xd9   :  { %v185_v28 = vpack.c.bf16 %v168_v27, %v168_v27 }
  0xdb   :  { %206 = vmatmul.bf16.vlgmr.msra.gmra.mxu1 %v185_v28 }
 0x158   :  { %v207_v37 = vpop.f32.mrf.mxu1 }
 0x159   :  { %v208_v38 = vadd.f32 %v284_v36, %v207_v37 }
 0x15b   :  { %v211_v39 = vmax.f32 %v208_v38, 0.0 }
 0x15d   :  { %v228_v33 = vpack.c.bf16 %v211_v39, %v211_v39 }
 0x15f   :  { %249 = vmatmul.bf16.vlgmr.msra.gmra.mxu2 %v228_v33 }
 0x160   :  { %v209_v40 = vpop.f32.mrf.mxu1 }
 0x1e2   :  { %v250_v42 = vpop.f32.mrf.mxu2 }
 0x1e3   :  { %v251_v43 = vadd.f32 %v285_v41, %v250_v42 }
 0x1e5   :  { %254 = vst [vmem:[#allocation10] sm:$0xff] %v251_v43 }
 0x1e6   :  { %265 = dma.vmem_to_hbm [thread:$0]  %s261_s14, 128, %s263_s17, [#allocation4]  }
 0x1ea   :  { %v252_v44 = vpop.f32.mrf.mxu2 }
 0x1eb   :  { %416 = dma.done.wait [#allocation4], 128  }
 0x1ec   :  { %417 = vsyncadd [#allocation4], 4294967168 }
 0x1ed   :  { %270 = vsyncpa [#allocation3], 1 }
 0x1ee   :  { %271 = vsyncpa [#allocation6], 1 }
 0x1ef   :  { %272 = vsyncpa [#allocation9], 1 }
 0x1f0   :  { %273 = vsyncpa [#allocation4], 1 }

</bundles_post_ra>
